<compile_context>
chip_gen: v6e
topology: v6e:2x2x1
jax: 0.10.0
libtpu: 0.0.40
codegen_flags: <defaults>
</compile_context>

<pallas_src>
import functools

import numpy as np
import jax
import jax.numpy as jnp
from jax import lax
from jax.experimental import pallas as pl
from jax.experimental.pallas import tpu as pltpu  # noqa: F401  (TPU backend)


def _bmm(a, b):
    """(B, M, K) @ (B, K, N) -> (B, M, N) batched matmul on the MXU, f32 acc."""
    return lax.dot_general(a, b, (((2,), (1,)), ((0,), (0,))),
                           preferred_element_type=jnp.float32)


def transposed_conv_block_kernel(x_ref, w_ref, b_ref, o_ref, *,
                                 stride, kernel_size, dilations):
    """Fused TransposedConvBlock forward.

    x_ref : (B, C, L_in)          input
    w_ref : ((1+NL)*K, C, C)      per-tap (C_out, C_in) weights, layer-major.
                                  Layer 0 = upsample ConvTranspose1d already
                                  converted to ordinary-conv form; weight_norm
                                  is folded host-side (exact reparam).
    b_ref : (1+NL, C, 1)          biases
    o_ref : (B, C, L_out)         output, L_out = L_in * stride for k=3, p=k//2
    """
    B, C, L_in = x_ref.shape
    L_out = o_ref.shape[-1]
    K = kernel_size

    def time_select(h, sel):
        # Apply a 0/1 time-selection matrix with one batched MXU matmul.
        # h: (B, C, Lh) x sel: (Lh, Ls) -> (B, C, Ls)
        return _bmm(h, jnp.broadcast_to(sel[None], (B,) + sel.shape))

    def conv_taps(h_pad, layer, dil, length):
        # y[:, co, t] = bias[co] + sum_{kk,ci} W[co,ci,kk] * h_pad[:, ci, t + kk*dil]
        acc = None
        for kk in range(K):
            w_kk = jnp.broadcast_to(w_ref[layer * K + kk][None], (B, C, C))
            part = _bmm(w_kk, h_pad[:, :, kk * dil: kk * dil + length])
            acc = part if acc is None else acc + part
        return acc + b_ref[layer][None, :, :]

    x = x_ref[...].astype(jnp.float32)

    # ---- upsample: ConvTranspose1d == zero-stuff + asymmetric pad + conv ----
    pad = K // 2
    off = K - 1 - pad                    # left padding of the equivalent conv
    L_sp = L_out + K - 1                 # stuffed + padded length
    row = lax.broadcasted_iota(jnp.int32, (L_in, L_sp), 0)
    col = lax.broadcasted_iota(jnp.int32, (L_in, L_sp), 1)
    stuff_sel = (col == row * stride + off).astype(jnp.float32)
    x_sp = time_select(x, stuff_sel)                 # (B, C, L_sp)
    h = conv_taps(x_sp, 0, 1, L_out)                 # (B, C, L_out)
    orig = h                                         # residual branch

    # ---- dilated conv stack: same-pad -> conv(dilation) -> SiLU ----
    for j, dil in enumerate(dilations):
        total = (K - 1) * dil
        left = total // 2
        Lp = L_out + total
        row = lax.broadcasted_iota(jnp.int32, (L_out, Lp), 0)
        col = lax.broadcasted_iota(jnp.int32, (L_out, Lp), 1)
        pad_sel = (col == row + left).astype(jnp.float32)
        h_pad = time_select(h, pad_sel)              # (B, C, Lp)
        z = conv_taps(h_pad, 1 + j, dil, L_out)      # (B, C, L_out)
        h = z * (1.0 / (1.0 + jnp.exp(-z)))          # SiLU (exp -> EUP slot)

    # kernel_size is odd and every conv is exactly 'same', so lengths match
    # and the module's trim branch is statically a no-op here.
    o_ref[...] = (h + orig).astype(o_ref.dtype)


def transposed_conv_block(x, w_all, b_all, *, stride, kernel_size, dilations):
    B, C, L_in = x.shape
    pad = kernel_size // 2
    L_out = (L_in - 1) * stride - 2 * pad + kernel_size + (stride - 1)
    kernel = functools.partial(
        transposed_conv_block_kernel,
        stride=stride, kernel_size=kernel_size, dilations=tuple(dilations))
    return pl.pallas_call(
        kernel,
        out_shape=jax.ShapeDtypeStruct((B, C, L_out), x.dtype),
    )(x, w_all, b_all)


def reference_forward(x, w_up, b_up, conv_ws, conv_bs, stride, K, dilations):
    """NumPy float64 reference with PyTorch semantics (weight_norm pre-folded)."""
    B, Cin, L = x.shape
    pad = K // 2
    Cout = w_up.shape[1]
    L_out = (L - 1) * stride - 2 * pad + K + (stride - 1)

    # ConvTranspose1d: y[b,co,t] = b[co] + sum_{ci,i,kk: i*s - p + kk = t} w[ci,co,kk] x[b,ci,i]
    y = np.zeros((B, Cout, L_out), dtype=np.float64)
    for i in range(L):
        for kk in range(K):
            t = i * stride - pad + kk
            if 0 <= t < L_out:
                y[:, :, t] += x[:, :, i] @ w_up[:, :, kk]
    y += b_up[None, :, None]

    orig = y
    h = y
    for w, b, d in zip(conv_ws, conv_bs, dilations):
        total = (K - 1) * d
        left = total // 2
        right = total - left
        hp = np.pad(h, ((0, 0), (0, 0), (left, right)))
        Lh = h.shape[-1]
        z = np.zeros_like(h)
        for kk in range(K):
            z += np.einsum('oi,bil->bol', w[:, :, kk],
                           hp[:, :, kk * d: kk * d + Lh])
        z += b[None, :, None]
        h = z / (1.0 + np.exp(-z))        # SiLU

    n = min(h.shape[-1], orig.shape[-1])  # trim branch (no-op for k=3)
    return h[..., :n] + orig[..., :n]


if __name__ == "__main__":
    # Small config consistent with the module: stride=2, channels=4, L=16.
    B, C, L_IN = 2, 4, 16
    STRIDE, KS = 2, 3
    NUM_LAYERS, DIL_GROWTH = 3, 2
    DILATIONS = tuple(DIL_GROWTH ** (NUM_LAYERS - 1 - i)
                      for i in range(NUM_LAYERS))          # (4, 2, 1)

    key = jax.random.PRNGKey(0)
    kit = iter(jax.random.split(key, 32))

    x = jax.random.normal(next(kit), (B, C, L_IN), jnp.float32)

    def rnd_normal(shape, scale):
        return np.asarray(jax.random.normal(next(kit), shape, jnp.float32),
                          np.float64) * scale

    def rnd_uniform(shape, lo, hi):
        return np.asarray(jax.random.uniform(next(kit), shape, jnp.float32, lo, hi),
                          np.float64)

    def wn_fold(v, g):
        # PyTorch weight_norm (default dim=0): w = g * v / ||v||, norm over all
        # dims except dim 0.  Exact reparameterization -> fold at inference.
        n = np.sqrt(np.sum(v * v, axis=(1, 2), keepdims=True))
        return g[:, None, None] * v / n

    # upsample ConvTranspose1d: weight (C_in, C_out, K), weight_norm (v, g), bias
    v_up = rnd_normal((C, C, KS), 0.5)
    g_up = rnd_uniform((C,), 0.5, 1.5)
    b_up = rnd_normal((C,), 0.1)
    w_up_eff = wn_fold(v_up, g_up)                          # (C_in, C_out, K)

    # dilated Conv1d layers: weight (C_out, C_in, K), weight_norm (v, g), bias
    conv_w_eff, conv_b = [], []
    for _ in range(NUM_LAYERS):
        v = rnd_normal((C, C, KS), 0.5)
        g = rnd_uniform((C,), 0.5, 1.5)
        bb = rnd_normal((C,), 0.1)
        conv_w_eff.append(wn_fold(v, g))
        conv_b.append(bb)

    # ---- pack parameters for the kernel ----
    # ConvTranspose1d -> equivalent ordinary conv: transpose channels, flip taps.
    w_up_conv = np.flip(np.transpose(w_up_eff, (1, 0, 2)), axis=2)  # (C_out, C_in, K)
    taps = [np.transpose(w_up_conv, (2, 0, 1))]                     # (K, C_out, C_in)
    taps += [np.transpose(w, (2, 0, 1)) for w in conv_w_eff]
    w_all = jnp.asarray(np.concatenate(taps, axis=0), jnp.float32)  # (12, C, C)
    b_all = jnp.asarray(np.stack([b_up] + conv_b)[:, :, None], jnp.float32)  # (4, C, 1)

    out = transposed_conv_block(x, w_all, b_all, stride=STRIDE,
                                kernel_size=KS, dilations=DILATIONS)
    out = jax.block_until_ready(out)

    ref = reference_forward(np.asarray(x, np.float64), w_up_eff, b_up,
                            conv_w_eff, conv_b, STRIDE, KS, DILATIONS)

    assert out.shape == ref.shape, (out.shape, ref.shape)
    assert np.allclose(np.asarray(out, np.float64), ref, atol=1e-3, rtol=1e-3), \
        "mismatch vs reference"
    print("KERNEL_OK")
</pallas_src>

<mosaic_0001>
module attributes {stable_mosaic.version = 11 : i64} {
  func.func @transposed_conv_block_kernel(%arg0: memref<2x4x16xf32, #tpu.memory_space<vmem>>, %arg1: memref<12x4x4xf32, #tpu.memory_space<vmem>>, %arg2: memref<4x4x1xf32, #tpu.memory_space<vmem>>, %arg3: memref<2x4x32xf32, #tpu.memory_space<vmem>>) attributes {dimension_semantics = [], scalar_prefetch = 0 : i64, scratch_operands = 0 : i64, tpu.core_type = #tpu.core_type<tc>} {
    %c0 = arith.constant 0 : index
    %c0_0 = arith.constant 0 : index
    %c0_1 = arith.constant 0 : index
    %0 = vector.load %arg0[%c0, %c0_0, %c0_1] : memref<2x4x16xf32, #tpu.memory_space<vmem>>, vector<2x4x16xf32>
    %1 = tpu.iota {dimensions = array<i32: 0>} : vector<16x34xi32>
    %2 = tpu.iota {dimensions = array<i32: 1>} : vector<16x34xi32>
    %c2_i32 = arith.constant 2 : i32
    %3 = vector.broadcast %c2_i32 : i32 to vector<16x34xi32>
    %4 = arith.muli %1, %3 : vector<16x34xi32>
    %c1_i32 = arith.constant 1 : i32
    %5 = vector.broadcast %c1_i32 : i32 to vector<16x34xi32>
    %6 = arith.addi %4, %5 : vector<16x34xi32>
    %7 = arith.cmpi eq, %2, %6 : vector<16x34xi32>
    %8 = arith.extui %7 : vector<16x34xi1> to vector<16x34xi32>
    %9 = arith.sitofp %8 : vector<16x34xi32> to vector<16x34xf32>
    %10 = vector.shape_cast %9 : vector<16x34xf32> to vector<1x16x34xf32>
    %11 = vector.shape_cast %10 : vector<1x16x34xf32> to vector<1x16x34xf32>
    %12 = vector.broadcast %11 : vector<1x16x34xf32> to vector<2x16x34xf32>
    %cst = arith.constant dense<0.000000e+00> : vector<2x4x34xf32>
    %13 = tpu.matmul %0, %12, %cst {dimension_numbers = #tpu.dot_dimension_numbers<[2], [1], [1], [2], [0, 0, 0, 1, 1, 2], [0], [0]>} : vector<2x4x16xf32>, vector<2x16x34xf32>, vector<2x4x34xf32> -> vector<2x4x34xf32>
    %c0_2 = arith.constant 0 : index
    %c0_3 = arith.constant 0 : index
    %c0_4 = arith.constant 0 : index
    %14 = vector.load %arg1[%c0_2, %c0_3, %c0_4] : memref<12x4x4xf32, #tpu.memory_space<vmem>>, vector<1x4x4xf32>
    %15 = vector.shape_cast %14 : vector<1x4x4xf32> to vector<4x4xf32>
    %16 = vector.shape_cast %15 : vector<4x4xf32> to vector<1x4x4xf32>
    %17 = vector.shape_cast %16 : vector<1x4x4xf32> to vector<1x4x4xf32>
    %18 = vector.broadcast %17 : vector<1x4x4xf32> to vector<2x4x4xf32>
    %19 = vector.extract_strided_slice %13 {offsets = [0, 0, 0], sizes = [2, 4, 32], strides = [1, 1, 1]} : vector<2x4x34xf32> to vector<2x4x32xf32>
    %cst_5 = arith.constant dense<0.000000e+00> : vector<2x4x32xf32>
    %20 = tpu.matmul %18, %19, %cst_5 {dimension_numbers = #tpu.dot_dimension_numbers<[2], [1], [1], [2], [0, 0, 0, 1, 1, 2], [0], [0]>} : vector<2x4x4xf32>, vector<2x4x32xf32>, vector<2x4x32xf32> -> vector<2x4x32xf32>
    %c1 = arith.constant 1 : index
    %c0_6 = arith.constant 0 : index
    %c0_7 = arith.constant 0 : index
    %21 = vector.load %arg1[%c1, %c0_6, %c0_7] : memref<12x4x4xf32, #tpu.memory_space<vmem>>, vector<1x4x4xf32>
    %22 = vector.shape_cast %21 : vector<1x4x4xf32> to vector<4x4xf32>
    %23 = vector.shape_cast %22 : vector<4x4xf32> to vector<1x4x4xf32>
    %24 = vector.shape_cast %23 : vector<1x4x4xf32> to vector<1x4x4xf32>
    %25 = vector.broadcast %24 : vector<1x4x4xf32> to vector<2x4x4xf32>
    %26 = vector.extract_strided_slice %13 {offsets = [0, 0, 1], sizes = [2, 4, 32], strides = [1, 1, 1]} : vector<2x4x34xf32> to vector<2x4x32xf32>
    %cst_8 = arith.constant dense<0.000000e+00> : vector<2x4x32xf32>
    %27 = tpu.matmul %25, %26, %cst_8 {dimension_numbers = #tpu.dot_dimension_numbers<[2], [1], [1], [2], [0, 0, 0, 1, 1, 2], [0], [0]>} : vector<2x4x4xf32>, vector<2x4x32xf32>, vector<2x4x32xf32> -> vector<2x4x32xf32>
    %28 = arith.addf %20, %27 : vector<2x4x32xf32>
    %c2 = arith.constant 2 : index
    %c0_9 = arith.constant 0 : index
    %c0_10 = arith.constant 0 : index
    %29 = vector.load %arg1[%c2, %c0_9, %c0_10] : memref<12x4x4xf32, #tpu.memory_space<vmem>>, vector<1x4x4xf32>
    %30 = vector.shape_cast %29 : vector<1x4x4xf32> to vector<4x4xf32>
    %31 = vector.shape_cast %30 : vector<4x4xf32> to vector<1x4x4xf32>
    %32 = vector.shape_cast %31 : vector<1x4x4xf32> to vector<1x4x4xf32>
    %33 = vector.broadcast %32 : vector<1x4x4xf32> to vector<2x4x4xf32>
    %34 = vector.extract_strided_slice %13 {offsets = [0, 0, 2], sizes = [2, 4, 32], strides = [1, 1, 1]} : vector<2x4x34xf32> to vector<2x4x32xf32>
    %cst_11 = arith.constant dense<0.000000e+00> : vector<2x4x32xf32>
    %35 = tpu.matmul %33, %34, %cst_11 {dimension_numbers = #tpu.dot_dimension_numbers<[2], [1], [1], [2], [0, 0, 0, 1, 1, 2], [0], [0]>} : vector<2x4x4xf32>, vector<2x4x32xf32>, vector<2x4x32xf32> -> vector<2x4x32xf32>
    %36 = arith.addf %28, %35 : vector<2x4x32xf32>
    %c0_12 = arith.constant 0 : index
    %c0_13 = arith.constant 0 : index
    %c0_14 = arith.constant 0 : index
    %37 = vector.load %arg2[%c0_12, %c0_13, %c0_14] : memref<4x4x1xf32, #tpu.memory_space<vmem>>, vector<1x4x1xf32>
    %38 = vector.shape_cast %37 : vector<1x4x1xf32> to vector<4x1xf32>
    %39 = vector.shape_cast %38 : vector<4x1xf32> to vector<1x4x1xf32>
    %40 = vector.broadcast %39 : vector<1x4x1xf32> to vector<2x4x32xf32>
    %41 = arith.addf %36, %40 : vector<2x4x32xf32>
    %42 = tpu.iota {dimensions = array<i32: 0>} : vector<32x40xi32>
    %43 = tpu.iota {dimensions = array<i32: 1>} : vector<32x40xi32>
    %c4_i32 = arith.constant 4 : i32
    %44 = vector.broadcast %c4_i32 : i32 to vector<32x40xi32>
    %45 = arith.addi %42, %44 : vector<32x40xi32>
    %46 = arith.cmpi eq, %43, %45 : vector<32x40xi32>
    %47 = arith.extui %46 : vector<32x40xi1> to vector<32x40xi32>
    %48 = arith.sitofp %47 : vector<32x40xi32> to vector<32x40xf32>
    %49 = vector.shape_cast %48 : vector<32x40xf32> to vector<1x32x40xf32>
    %50 = vector.shape_cast %49 : vector<1x32x40xf32> to vector<1x32x40xf32>
    %51 = vector.broadcast %50 : vector<1x32x40xf32> to vector<2x32x40xf32>
    %cst_15 = arith.constant dense<0.000000e+00> : vector<2x4x40xf32>
    %52 = tpu.matmul %41, %51, %cst_15 {dimension_numbers = #tpu.dot_dimension_numbers<[2], [1], [1], [2], [0, 0, 0, 1, 1, 2], [0], [0]>} : vector<2x4x32xf32>, vector<2x32x40xf32>, vector<2x4x40xf32> -> vector<2x4x40xf32>
    %c3 = arith.constant 3 : index
    %c0_16 = arith.constant 0 : index
    %c0_17 = arith.constant 0 : index
    %53 = vector.load %arg1[%c3, %c0_16, %c0_17] : memref<12x4x4xf32, #tpu.memory_space<vmem>>, vector<1x4x4xf32>
    %54 = vector.shape_cast %53 : vector<1x4x4xf32> to vector<4x4xf32>
    %55 = vector.shape_cast %54 : vector<4x4xf32> to vector<1x4x4xf32>
    %56 = vector.shape_cast %55 : vector<1x4x4xf32> to vector<1x4x4xf32>
    %57 = vector.broadcast %56 : vector<1x4x4xf32> to vector<2x4x4xf32>
    %58 = vector.extract_strided_slice %52 {offsets = [0, 0, 0], sizes = [2, 4, 32], strides = [1, 1, 1]} : vector<2x4x40xf32> to vector<2x4x32xf32>
    %cst_18 = arith.constant dense<0.000000e+00> : vector<2x4x32xf32>
    %59 = tpu.matmul %57, %58, %cst_18 {dimension_numbers = #tpu.dot_dimension_numbers<[2], [1], [1], [2], [0, 0, 0, 1, 1, 2], [0], [0]>} : vector<2x4x4xf32>, vector<2x4x32xf32>, vector<2x4x32xf32> -> vector<2x4x32xf32>
    %c4 = arith.constant 4 : index
    %c0_19 = arith.constant 0 : index
    %c0_20 = arith.constant 0 : index
    %60 = vector.load %arg1[%c4, %c0_19, %c0_20] : memref<12x4x4xf32, #tpu.memory_space<vmem>>, vector<1x4x4xf32>
    %61 = vector.shape_cast %60 : vector<1x4x4xf32> to vector<4x4xf32>
    %62 = vector.shape_cast %61 : vector<4x4xf32> to vector<1x4x4xf32>
    %63 = vector.shape_cast %62 : vector<1x4x4xf32> to vector<1x4x4xf32>
    %64 = vector.broadcast %63 : vector<1x4x4xf32> to vector<2x4x4xf32>
    %65 = vector.extract_strided_slice %52 {offsets = [0, 0, 4], sizes = [2, 4, 32], strides = [1, 1, 1]} : vector<2x4x40xf32> to vector<2x4x32xf32>
    %cst_21 = arith.constant dense<0.000000e+00> : vector<2x4x32xf32>
    %66 = tpu.matmul %64, %65, %cst_21 {dimension_numbers = #tpu.dot_dimension_numbers<[2], [1], [1], [2], [0, 0, 0, 1, 1, 2], [0], [0]>} : vector<2x4x4xf32>, vector<2x4x32xf32>, vector<2x4x32xf32> -> vector<2x4x32xf32>
    %67 = arith.addf %59, %66 : vector<2x4x32xf32>
    %c5 = arith.constant 5 : index
    %c0_22 = arith.constant 0 : index
    %c0_23 = arith.constant 0 : index
    %68 = vector.load %arg1[%c5, %c0_22, %c0_23] : memref<12x4x4xf32, #tpu.memory_space<vmem>>, vector<1x4x4xf32>
    %69 = vector.shape_cast %68 : vector<1x4x4xf32> to vector<4x4xf32>
    %70 = vector.shape_cast %69 : vector<4x4xf32> to vector<1x4x4xf32>
    %71 = vector.shape_cast %70 : vector<1x4x4xf32> to vector<1x4x4xf32>
    %72 = vector.broadcast %71 : vector<1x4x4xf32> to vector<2x4x4xf32>
    %73 = vector.extract_strided_slice %52 {offsets = [0, 0, 8], sizes = [2, 4, 32], strides = [1, 1, 1]} : vector<2x4x40xf32> to vector<2x4x32xf32>
    %cst_24 = arith.constant dense<0.000000e+00> : vector<2x4x32xf32>
    %74 = tpu.matmul %72, %73, %cst_24 {dimension_numbers = #tpu.dot_dimension_numbers<[2], [1], [1], [2], [0, 0, 0, 1, 1, 2], [0], [0]>} : vector<2x4x4xf32>, vector<2x4x32xf32>, vector<2x4x32xf32> -> vector<2x4x32xf32>
    %75 = arith.addf %67, %74 : vector<2x4x32xf32>
    %c1_25 = arith.constant 1 : index
    %c0_26 = arith.constant 0 : index
    %c0_27 = arith.constant 0 : index
    %76 = vector.load %arg2[%c1_25, %c0_26, %c0_27] : memref<4x4x1xf32, #tpu.memory_space<vmem>>, vector<1x4x1xf32>
    %77 = vector.shape_cast %76 : vector<1x4x1xf32> to vector<4x1xf32>
    %78 = vector.shape_cast %77 : vector<4x1xf32> to vector<1x4x1xf32>
    %79 = vector.broadcast %78 : vector<1x4x1xf32> to vector<2x4x32xf32>
    %80 = arith.addf %75, %79 : vector<2x4x32xf32>
    %cst_28 = arith.constant 0.000000e+00 : f32
    %81 = vector.broadcast %cst_28 : f32 to vector<2x4x32xf32>
    %82 = arith.subf %81, %80 : vector<2x4x32xf32>
    %83 = math.exp %82 : vector<2x4x32xf32>
    %cst_29 = arith.constant 1.000000e+00 : f32
    %84 = vector.broadcast %cst_29 : f32 to vector<2x4x32xf32>
    %85 = arith.addf %84, %83 : vector<2x4x32xf32>
    %cst_30 = arith.constant 1.000000e+00 : f32
    %86 = vector.broadcast %cst_30 : f32 to vector<2x4x32xf32>
    %87 = arith.divf %86, %85 : vector<2x4x32xf32>
    %88 = arith.mulf %80, %87 : vector<2x4x32xf32>
    %89 = tpu.iota {dimensions = array<i32: 0>} : vector<32x36xi32>
    %90 = tpu.iota {dimensions = array<i32: 1>} : vector<32x36xi32>
    %c2_i32_31 = arith.constant 2 : i32
    %91 = vector.broadcast %c2_i32_31 : i32 to vector<32x36xi32>
    %92 = arith.addi %89, %91 : vector<32x36xi32>
    %93 = arith.cmpi eq, %90, %92 : vector<32x36xi32>
    %94 = arith.extui %93 : vector<32x36xi1> to vector<32x36xi32>
    %95 = arith.sitofp %94 : vector<32x36xi32> to vector<32x36xf32>
    %96 = vector.shape_cast %95 : vector<32x36xf32> to vector<1x32x36xf32>
    %97 = vector.shape_cast %96 : vector<1x32x36xf32> to vector<1x32x36xf32>
    %98 = vector.broadcast %97 : vector<1x32x36xf32> to vector<2x32x36xf32>
    %cst_32 = arith.constant dense<0.000000e+00> : vector<2x4x36xf32>
    %99 = tpu.matmul %88, %98, %cst_32 {dimension_numbers = #tpu.dot_dimension_numbers<[2], [1], [1], [2], [0, 0, 0, 1, 1, 2], [0], [0]>} : vector<2x4x32xf32>, vector<2x32x36xf32>, vector<2x4x36xf32> -> vector<2x4x36xf32>
    %c6 = arith.constant 6 : index
    %c0_33 = arith.constant 0 : index
    %c0_34 = arith.constant 0 : index
    %100 = vector.load %arg1[%c6, %c0_33, %c0_34] : memref<12x4x4xf32, #tpu.memory_space<vmem>>, vector<1x4x4xf32>
    %101 = vector.shape_cast %100 : vector<1x4x4xf32> to vector<4x4xf32>
    %102 = vector.shape_cast %101 : vector<4x4xf32> to vector<1x4x4xf32>
    %103 = vector.shape_cast %102 : vector<1x4x4xf32> to vector<1x4x4xf32>
    %104 = vector.broadcast %103 : vector<1x4x4xf32> to vector<2x4x4xf32>
    %105 = vector.extract_strided_slice %99 {offsets = [0, 0, 0], sizes = [2, 4, 32], strides = [1, 1, 1]} : vector<2x4x36xf32> to vector<2x4x32xf32>
    %cst_35 = arith.constant dense<0.000000e+00> : vector<2x4x32xf32>
    %106 = tpu.matmul %104, %105, %cst_35 {dimension_numbers = #tpu.dot_dimension_numbers<[2], [1], [1], [2], [0, 0, 0, 1, 1, 2], [0], [0]>} : vector<2x4x4xf32>, vector<2x4x32xf32>, vector<2x4x32xf32> -> vector<2x4x32xf32>
    %c7 = arith.constant 7 : index
    %c0_36 = arith.constant 0 : index
    %c0_37 = arith.constant 0 : index
    %107 = vector.load %arg1[%c7, %c0_36, %c0_37] : memref<12x4x4xf32, #tpu.memory_space<vmem>>, vector<1x4x4xf32>
    %108 = vector.shape_cast %107 : vector<1x4x4xf32> to vector<4x4xf32>
    %109 = vector.shape_cast %108 : vector<4x4xf32> to vector<1x4x4xf32>
    %110 = vector.shape_cast %109 : vector<1x4x4xf32> to vector<1x4x4xf32>
    %111 = vector.broadcast %110 : vector<1x4x4xf32> to vector<2x4x4xf32>
    %112 = vector.extract_strided_slice %99 {offsets = [0, 0, 2], sizes = [2, 4, 32], strides = [1, 1, 1]} : vector<2x4x36xf32> to vector<2x4x32xf32>
    %cst_38 = arith.constant dense<0.000000e+00> : vector<2x4x32xf32>
    %113 = tpu.matmul %111, %112, %cst_38 {dimension_numbers = #tpu.dot_dimension_numbers<[2], [1], [1], [2], [0, 0, 0, 1, 1, 2], [0], [0]>} : vector<2x4x4xf32>, vector<2x4x32xf32>, vector<2x4x32xf32> -> vector<2x4x32xf32>
    %114 = arith.addf %106, %113 : vector<2x4x32xf32>
    %c8 = arith.constant 8 : index
    %c0_39 = arith.constant 0 : index
    %c0_40 = arith.constant 0 : index
    %115 = vector.load %arg1[%c8, %c0_39, %c0_40] : memref<12x4x4xf32, #tpu.memory_space<vmem>>, vector<1x4x4xf32>
    %116 = vector.shape_cast %115 : vector<1x4x4xf32> to vector<4x4xf32>
    %117 = vector.shape_cast %116 : vector<4x4xf32> to vector<1x4x4xf32>
    %118 = vector.shape_cast %117 : vector<1x4x4xf32> to vector<1x4x4xf32>
    %119 = vector.broadcast %118 : vector<1x4x4xf32> to vector<2x4x4xf32>
    %120 = vector.extract_strided_slice %99 {offsets = [0, 0, 4], sizes = [2, 4, 32], strides = [1, 1, 1]} : vector<2x4x36xf32> to vector<2x4x32xf32>
    %cst_41 = arith.constant dense<0.000000e+00> : vector<2x4x32xf32>
    %121 = tpu.matmul %119, %120, %cst_41 {dimension_numbers = #tpu.dot_dimension_numbers<[2], [1], [1], [2], [0, 0, 0, 1, 1, 2], [0], [0]>} : vector<2x4x4xf32>, vector<2x4x32xf32>, vector<2x4x32xf32> -> vector<2x4x32xf32>
    %122 = arith.addf %114, %121 : vector<2x4x32xf32>
    %c2_42 = arith.constant 2 : index
    %c0_43 = arith.constant 0 : index
    %c0_44 = arith.constant 0 : index
    %123 = vector.load %arg2[%c2_42, %c0_43, %c0_44] : memref<4x4x1xf32, #tpu.memory_space<vmem>>, vector<1x4x1xf32>
    %124 = vector.shape_cast %123 : vector<1x4x1xf32> to vector<4x1xf32>
    %125 = vector.shape_cast %124 : vector<4x1xf32> to vector<1x4x1xf32>
    %126 = vector.broadcast %125 : vector<1x4x1xf32> to vector<2x4x32xf32>
    %127 = arith.addf %122, %126 : vector<2x4x32xf32>
    %cst_45 = arith.constant 0.000000e+00 : f32
    %128 = vector.broadcast %cst_45 : f32 to vector<2x4x32xf32>
    %129 = arith.subf %128, %127 : vector<2x4x32xf32>
    %130 = math.exp %129 : vector<2x4x32xf32>
    %cst_46 = arith.constant 1.000000e+00 : f32
    %131 = vector.broadcast %cst_46 : f32 to vector<2x4x32xf32>
    %132 = arith.addf %131, %130 : vector<2x4x32xf32>
    %cst_47 = arith.constant 1.000000e+00 : f32
    %133 = vector.broadcast %cst_47 : f32 to vector<2x4x32xf32>
    %134 = arith.divf %133, %132 : vector<2x4x32xf32>
    %135 = arith.mulf %127, %134 : vector<2x4x32xf32>
    %136 = tpu.iota {dimensions = array<i32: 0>} : vector<32x34xi32>
    %137 = tpu.iota {dimensions = array<i32: 1>} : vector<32x34xi32>
    %c1_i32_48 = arith.constant 1 : i32
    %138 = vector.broadcast %c1_i32_48 : i32 to vector<32x34xi32>
    %139 = arith.addi %136, %138 : vector<32x34xi32>
    %140 = arith.cmpi eq, %137, %139 : vector<32x34xi32>
    %141 = arith.extui %140 : vector<32x34xi1> to vector<32x34xi32>
    %142 = arith.sitofp %141 : vector<32x34xi32> to vector<32x34xf32>
    %143 = vector.shape_cast %142 : vector<32x34xf32> to vector<1x32x34xf32>
    %144 = vector.shape_cast %143 : vector<1x32x34xf32> to vector<1x32x34xf32>
    %145 = vector.broadcast %144 : vector<1x32x34xf32> to vector<2x32x34xf32>
    %cst_49 = arith.constant dense<0.000000e+00> : vector<2x4x34xf32>
    %146 = tpu.matmul %135, %145, %cst_49 {dimension_numbers = #tpu.dot_dimension_numbers<[2], [1], [1], [2], [0, 0, 0, 1, 1, 2], [0], [0]>} : vector<2x4x32xf32>, vector<2x32x34xf32>, vector<2x4x34xf32> -> vector<2x4x34xf32>
    %c9 = arith.constant 9 : index
    %c0_50 = arith.constant 0 : index
    %c0_51 = arith.constant 0 : index
    %147 = vector.load %arg1[%c9, %c0_50, %c0_51] : memref<12x4x4xf32, #tpu.memory_space<vmem>>, vector<1x4x4xf32>
    %148 = vector.shape_cast %147 : vector<1x4x4xf32> to vector<4x4xf32>
    %149 = vector.shape_cast %148 : vector<4x4xf32> to vector<1x4x4xf32>
    %150 = vector.shape_cast %149 : vector<1x4x4xf32> to vector<1x4x4xf32>
    %151 = vector.broadcast %150 : vector<1x4x4xf32> to vector<2x4x4xf32>
    %152 = vector.extract_strided_slice %146 {offsets = [0, 0, 0], sizes = [2, 4, 32], strides = [1, 1, 1]} : vector<2x4x34xf32> to vector<2x4x32xf32>
    %cst_52 = arith.constant dense<0.000000e+00> : vector<2x4x32xf32>
    %153 = tpu.matmul %151, %152, %cst_52 {dimension_numbers = #tpu.dot_dimension_numbers<[2], [1], [1], [2], [0, 0, 0, 1, 1, 2], [0], [0]>} : vector<2x4x4xf32>, vector<2x4x32xf32>, vector<2x4x32xf32> -> vector<2x4x32xf32>
    %c10 = arith.constant 10 : index
    %c0_53 = arith.constant 0 : index
    %c0_54 = arith.constant 0 : index
    %154 = vector.load %arg1[%c10, %c0_53, %c0_54] : memref<12x4x4xf32, #tpu.memory_space<vmem>>, vector<1x4x4xf32>
    %155 = vector.shape_cast %154 : vector<1x4x4xf32> to vector<4x4xf32>
    %156 = vector.shape_cast %155 : vector<4x4xf32> to vector<1x4x4xf32>
    %157 = vector.shape_cast %156 : vector<1x4x4xf32> to vector<1x4x4xf32>
    %158 = vector.broadcast %157 : vector<1x4x4xf32> to vector<2x4x4xf32>
    %159 = vector.extract_strided_slice %146 {offsets = [0, 0, 1], sizes = [2, 4, 32], strides = [1, 1, 1]} : vector<2x4x34xf32> to vector<2x4x32xf32>
    %cst_55 = arith.constant dense<0.000000e+00> : vector<2x4x32xf32>
    %160 = tpu.matmul %158, %159, %cst_55 {dimension_numbers = #tpu.dot_dimension_numbers<[2], [1], [1], [2], [0, 0, 0, 1, 1, 2], [0], [0]>} : vector<2x4x4xf32>, vector<2x4x32xf32>, vector<2x4x32xf32> -> vector<2x4x32xf32>
    %161 = arith.addf %153, %160 : vector<2x4x32xf32>
    %c11 = arith.constant 11 : index
    %c0_56 = arith.constant 0 : index
    %c0_57 = arith.constant 0 : index
    %162 = vector.load %arg1[%c11, %c0_56, %c0_57] : memref<12x4x4xf32, #tpu.memory_space<vmem>>, vector<1x4x4xf32>
    %163 = vector.shape_cast %162 : vector<1x4x4xf32> to vector<4x4xf32>
    %164 = vector.shape_cast %163 : vector<4x4xf32> to vector<1x4x4xf32>
    %165 = vector.shape_cast %164 : vector<1x4x4xf32> to vector<1x4x4xf32>
    %166 = vector.broadcast %165 : vector<1x4x4xf32> to vector<2x4x4xf32>
    %167 = vector.extract_strided_slice %146 {offsets = [0, 0, 2], sizes = [2, 4, 32], strides = [1, 1, 1]} : vector<2x4x34xf32> to vector<2x4x32xf32>
    %cst_58 = arith.constant dense<0.000000e+00> : vector<2x4x32xf32>
    %168 = tpu.matmul %166, %167, %cst_58 {dimension_numbers = #tpu.dot_dimension_numbers<[2], [1], [1], [2], [0, 0, 0, 1, 1, 2], [0], [0]>} : vector<2x4x4xf32>, vector<2x4x32xf32>, vector<2x4x32xf32> -> vector<2x4x32xf32>
    %169 = arith.addf %161, %168 : vector<2x4x32xf32>
    %c3_59 = arith.constant 3 : index
    %c0_60 = arith.constant 0 : index
    %c0_61 = arith.constant 0 : index
    %170 = vector.load %arg2[%c3_59, %c0_60, %c0_61] : memref<4x4x1xf32, #tpu.memory_space<vmem>>, vector<1x4x1xf32>
    %171 = vector.shape_cast %170 : vector<1x4x1xf32> to vector<4x1xf32>
    %172 = vector.shape_cast %171 : vector<4x1xf32> to vector<1x4x1xf32>
    %173 = vector.broadcast %172 : vector<1x4x1xf32> to vector<2x4x32xf32>
    %174 = arith.addf %169, %173 : vector<2x4x32xf32>
    %cst_62 = arith.constant 0.000000e+00 : f32
    %175 = vector.broadcast %cst_62 : f32 to vector<2x4x32xf32>
    %176 = arith.subf %175, %174 : vector<2x4x32xf32>
    %177 = math.exp %176 : vector<2x4x32xf32>
    %cst_63 = arith.constant 1.000000e+00 : f32
    %178 = vector.broadcast %cst_63 : f32 to vector<2x4x32xf32>
    %179 = arith.addf %178, %177 : vector<2x4x32xf32>
    %cst_64 = arith.constant 1.000000e+00 : f32
    %180 = vector.broadcast %cst_64 : f32 to vector<2x4x32xf32>
    %181 = arith.divf %180, %179 : vector<2x4x32xf32>
    %182 = arith.mulf %174, %181 : vector<2x4x32xf32>
    %183 = arith.addf %182, %41 : vector<2x4x32xf32>
    %c0_65 = arith.constant 0 : index
    %c0_66 = arith.constant 0 : index
    %c0_67 = arith.constant 0 : index
    %184 = vector.load %arg3[%c0_65, %c0_66, %c0_67] : memref<2x4x32xf32, #tpu.memory_space<vmem>>, vector<2x4x32xf32>
    tpu.vector_store %arg3[%c0_65, %c0_66, %c0_67], %183 {strides = array<i32>} : memref<2x4x32xf32, #tpu.memory_space<vmem>>, vector<2x4x32xf32>,
    return
  }
}

</mosaic_0001>

<bundles_post_ra>
// kernel: tpu_custom_call.1
= control target key start
LH: loop header
LB: loop body
LE: loop exit
PB: predicated region body
PF: predicated region fallthrough
CT: control target
= control target key end

     0   :  { %v17_v0 = vlaneseq  ;;  %v3058_v1 = vmov 0.0   ;;  %s3407_s0 = inlined_call_operand.vmem [shape: f32[2,4,16], index: 0, kind: input, shape index: {}]   ;;  %s3408_s1 = inlined_call_operand.vmem [shape: f32[12,4,4], index: 1, kind: input, shape index: {}]   ;;  %s3409_s2 = inlined_call_operand.vmem [shape: f32[4,4,1], index: 2, kind: input, shape index: {}]   ;;  %s3410_s3 = inlined_call_operand.hbm [shape: f32[2,4,32], index: 3, kind: output, shape index: {}]  }
   0x1   :  { %2799 = vmatprep.subr.mxu0 %v3058_v1  ;;  %2806 = vmatprep.subr.mxu1 %v3058_v1 }
   0x2   :  { %8 = vsyncpa [#allocation3], 0  ;;  %v3091_v2 = vshrl.u32 %v17_v0, 7  ;;  %vm3059_vm0 = vmmov 0   ;;  %v3101_v5 = vand.u32 127, %v17_v0  ;;  %v3060_v9 = vmov 1.0  }
   0x3   :  { %2803 = vmatprep.mubr.msk.f32.mxu0 %vm3059_vm0, %v3058_v1  ;;  %2810 = vmatprep.mubr.msk.f32.mxu1 %vm3059_vm0, %v3058_v1  ;;  %v15_v10 = vld [vmem:[%s3407_s0] sm:$0xf]  ;;  %vm32_vm3 = vcmask 130048   ;;  %v16_v11 = vld [vmem:[%s3407_s0 + $0x4] sm:$0xf]  ;;  %s3061_s0 = smov 126  }
   0x4   :  { %v3098_v3 = vadd.s32 8, %v3091_v2  ;;  %v22_v4 = vmul.u32 2, %v3091_v2  ;;  %s3062_s16 = smov 127   ;;  %v3063_v16 = vmov 0   ;;  %v639_v17 = vld [vmem:[%s3409_s2] sm:$0xf] }
   0x5   :  { %3010 = vset.pattern.permute.xlu0 %v3063_v16  ;;  %3011 = vset.pattern.permute.xlu1 %v3063_v16  ;;  %vm189_vm4 = vcmask 1043456   ;;  %v2611_v18 = vld [vmem:[%s3408_s1 + $0x4] sm:$0xf]  ;;  %vm185_vm5 = vcmask 31744   ;;  %v179_v20 = vld [vmem:[%s3408_s1] sm:$0xf] }
   0x6   :  { %v23_v6 = vmul.u32 2, %v3098_v3  ;;  %v24_v7 = vadd.s32 1, %v22_v4  ;;  %v2620_v23 = vld [vmem:[%s3408_s1 + $0x8] sm:$0xf]  ;;  %v3171_v25 = vadd.s32 24, %v3091_v2  ;;  %v3175_v27 = vadd.s32 16, %v3091_v2 }
   0x7   :  { %v650_v29 = vadd.s32 4, %v3098_v3  ;;  %v649_v30 = vadd.s32 4, %v3091_v2  ;;  %vm665_vm10 = vcmask 261120   ;;  %s3064_s25 = smov 120   ;;  %s3065_s26 = smov 124   ;;  %v1295_v0 = vadd.s32 2, %v3098_v3 }
   0x8   :  { %v25_v8 = vadd.s32 1, %v23_v6  ;;  %vm26_vm2 = vcmp.eq.s32.totalorder %v3101_v5, %v24_v7  ;;  %v652_v26 = vadd.s32 4, %v3171_v25  ;;  %v651_v28 = vadd.s32 4, %v3175_v27  ;;  %v2654_v52 = vld [vmem:[%s3409_s2 + $0x4] sm:$0xf] }
   0x9   :  { %vm654_vm8 = vcmp.eq.s32.totalorder %v3101_v5, %v650_v29  ;;  %vm653_vm9 = vcmp.eq.s32.totalorder %v3101_v5, %v649_v30  ;;  %v2640_v55 = vld [vmem:[%s3408_s1 + $0x10] sm:$0xf]  ;;  %v2639_v57 = vld [vmem:[%s3408_s1 + $0xc] sm:$0xf]  ;;  %v2649_v60 = vld [vmem:[%s3408_s1 + $0x14] sm:$0xf]  ;;  %vm1299_vm13 = vcmp.eq.s32.totalorder %v3101_v5, %v1295_v0 }
   0xa   :  { %vm27_vm1 = vcmp.eq.s32.totalorder %v3101_v5, %v25_v8  ;;  %vm656_vm6 = vcmp.eq.s32.totalorder %v3101_v5, %v652_v26  ;;  %vm655_vm7 = vcmp.eq.s32.totalorder %v3101_v5, %v651_v28  ;;  %v1297_v62 = vadd.s32 2, %v3171_v25 }
   0xb   :  { %2800 = vmatpush3.msk.msra.mxu0 %vm27_vm1, %v3060_v9  ;;  %2807 = vmatpush3.msk.msra.mxu1 %vm27_vm1, %v3060_v9  ;;  %v1296_v63 = vadd.s32 2, %v3175_v27  ;;  %v1294_v4 = vadd.s32 2, %v3091_v2 }
   0xc   :  { %2801 = vmatprep.subr.mxu0 %v3058_v1  ;;  %2808 = vmatprep.subr.mxu1 %v3058_v1  ;;  %vm1301_vm11 = vcmp.eq.s32.totalorder %v3101_v5, %v1297_v62 }
   0xd   :  { %2802 = vmatpush3.msk.msra.mxu0 %vm26_vm2, %v3060_v9  ;;  %2809 = vmatpush3.msk.msra.mxu1 %vm26_vm2, %v3060_v9  ;;  %vm1300_vm12 = vcmp.eq.s32.totalorder %v3101_v5, %v1296_v63  ;;  %vm1298_vm14 = vcmp.eq.s32.totalorder %v3101_v5, %v1294_v4 }
   0xe   :  { %2804 = vmatmul.mubr.msk.f32.vlgmr.msra.gmra.mxu0 %vm32_vm3, %v15_v10  ;;  %2811 = vmatmul.mubr.msk.f32.vlgmr.msra.gmra.mxu1 %vm32_vm3, %v16_v11 }
   0xf   :  { %2813 = vmatprep.subr.mxu0 %v3058_v1  ;;  %2815 = vmatprep.mubr.msk.f32.mxu0 %vm3059_vm0, %v3058_v1 }
  0x10   :  { %2818 = vmatprep.subr.mxu1 %v3058_v1  ;;  %2820 = vmatprep.mubr.msk.f32.mxu1 %vm3059_vm0, %v3058_v1 }
  0xce   :  { %v102_v12 = vpop.f32.mrf.mxu0  ;;  %v175_v13 = vpop.f32.mrf.mxu1 }
  0xcf   :  { %486 = vrot.lane.b32.xlu1 %v102_v12, %s3061_s0  ;;  %183 = vrot.lane.b32.xlu0 %v102_v12, %s3062_s16 }
  0xd0   :  { %v2805_v14 = vpop.f32.mrf.mxu0  ;;  %v2812_v15 = vpop.f32.mrf.mxu1 }
  0xd3   :  { %563 = vrot.lane.b32.xlu1 %v175_v13, %s3061_s0  ;;  %263 = vrot.lane.b32.xlu0 %v175_v13, %s3062_s16 }
  0xd7   :  { %642 = vperm.xlu0 %3010, %v639_v17  }
 0x141   :  { %v184_v19 = vpop.permute.xlu0 %183  ;;  %v487_v21 = vpop.permute.xlu1 %486 }
 0x142   :  { %2814 = vmatpush3.msk.msra.mxu0 %vm189_vm4, %v184_v19 }
 0x143   :  { %2816 = vmatmul.mubr.msk.f32.vlgmr.msra.gmra.mxu0 %vm185_vm5, %v2611_v18  ;;  %2823 = vmatprep.subr.mxu0 %v3058_v1 }
 0x144   :  { %2824 = vmatpush3.msk.msra.mxu0 %vm189_vm4, %v102_v12  ;;  %2825 = vmatprep.mubr.msk.f32.mxu0 %vm3059_vm0, %v3058_v1 }
 0x145   :  { %v264_v22 = vpop.permute.xlu0 %263  ;;  %2833 = vmatprep.subr.mxu0 %v3058_v1  ;;  %v564_v24 = vpop.permute.xlu1 %563 }
 0x146   :  { %2819 = vmatpush3.msk.msra.mxu1 %vm189_vm4, %v264_v22 }
 0x147   :  { %2821 = vmatmul.mubr.msk.f32.vlgmr.msra.gmra.mxu1 %vm185_vm5, %v2611_v18  ;;  %2826 = vmatmul.mubr.msk.f32.vlgmr.msra.gmra.mxu0 %vm185_vm5, %v179_v20 }
 0x148   :  { %2828 = vmatprep.subr.mxu1 %v3058_v1  ;;  %2834 = vmatpush3.msk.msra.mxu0 %vm189_vm4, %v487_v21 }
 0x149   :  { %2829 = vmatpush3.msk.msra.mxu1 %vm189_vm4, %v175_v13  ;;  %2830 = vmatprep.mubr.msk.f32.mxu1 %vm3059_vm0, %v3058_v1 }
 0x14a   :  { %2835 = vmatprep.mubr.msk.f32.mxu0 %vm3059_vm0, %v3058_v1  ;;  %2838 = vmatprep.subr.mxu1 %v3058_v1 }
 0x14b   :  { %2831 = vmatmul.mubr.msk.f32.vlgmr.msra.gmra.mxu1 %vm185_vm5, %v179_v20  ;;  %2836 = vmatmul.mubr.msk.f32.vlgmr.msra.gmra.mxu0 %vm185_vm5, %v2620_v23 }
 0x14c   :  { %2839 = vmatpush3.msk.msra.mxu1 %vm189_vm4, %v564_v24  ;;  %2840 = vmatprep.mubr.msk.f32.mxu1 %vm3059_vm0, %v3058_v1 }
 0x14d   :  { %2843 = vmatprep.subr.mxu0 %v3058_v1  ;;  %2854 = vmatprep.subr.mxu1 %v3058_v1 }
 0x14e   :  { %2851 = vmatprep.mubr.msk.f32.mxu0 %vm3059_vm0, %v3058_v1  ;;  %2844 = vmatpush3.msk.msra.mxu0 %vm656_vm6, %v3060_v9 }
 0x14f   :  { %2841 = vmatmul.mubr.msk.f32.vlgmr.msra.gmra.mxu1 %vm185_vm5, %v2620_v23  ;;  %2845 = vmatprep.subr.mxu0 %v3058_v1 }
 0x150   :  { %2862 = vmatprep.mubr.msk.f32.mxu1 %vm3059_vm0, %v3058_v1  ;;  %2855 = vmatpush3.msk.msra.mxu1 %vm656_vm6, %v3060_v9 }
 0x151   :  { %2856 = vmatprep.subr.mxu1 %v3058_v1  ;;  %2846 = vmatpush3.msk.msra.mxu0 %vm655_vm7, %v3060_v9 }
 0x152   :  { %2857 = vmatpush3.msk.msra.mxu1 %vm655_vm7, %v3060_v9  ;;  %2847 = vmatprep.subr.mxu0 %v3058_v1  ;;  %v643_v38 = vpop.permute.xlu0 %642 }
 0x153   :  { %2858 = vmatprep.subr.mxu1 %v3058_v1  ;;  %2848 = vmatpush3.msk.msra.mxu0 %vm654_vm8, %v3060_v9 }
 0x154   :  { %2859 = vmatpush3.msk.msra.mxu1 %vm654_vm8, %v3060_v9  ;;  %2849 = vmatprep.subr.mxu0 %v3058_v1 }
 0x155   :  { %2860 = vmatprep.subr.mxu1 %v3058_v1  ;;  %2850 = vmatpush3.msk.msra.mxu0 %vm653_vm9, %v3060_v9 }
 0x156   :  { %2861 = vmatpush3.msk.msra.mxu1 %vm653_vm9, %v3060_v9  ;;  %2865 = vmatprep.subr.mxu0 %v3058_v1 }
 0x157   :  { %2870 = vmatprep.subr.mxu1 %v3058_v1 }
 0x203   :  { %v258_v31 = vpop.f32.mrf.mxu0 }
 0x205   :  { %v2817_v32 = vpop.f32.mrf.mxu0 }
 0x207   :  { %v333_v33 = vpop.f32.mrf.mxu1  ;;  %v408_v34 = vpop.f32.mrf.mxu0 }
 0x208   :  { %v409_v37 = vadd.f32 %v408_v34, %v258_v31 }
 0x209   :  { %v2822_v35 = vpop.f32.mrf.mxu1  ;;  %v2827_v36 = vpop.f32.mrf.mxu0 }
 0x20b   :  { %v480_v39 = vpop.f32.mrf.mxu1  ;;  %v559_v40 = vpop.f32.mrf.mxu0 }
 0x20c   :  { %v637_v41 = vadd.f32 %v559_v40, %v409_v37  ;;  %v481_v44 = vadd.f32 %v480_v39, %v333_v33 }
 0x20d   :  { %v2832_v42 = vpop.f32.mrf.mxu1  ;;  %v2837_v43 = vpop.f32.mrf.mxu0 }
 0x20e   :  { %v3200_v45 = vadd.f32 %v643_v38, %v637_v41 }
 0x20f   :  { %v633_v46 = vpop.f32.mrf.mxu1 }
 0x210   :  { %v638_v47 = vadd.f32 %v633_v46, %v481_v44  ;;  %2852 = vmatmul.mubr.msk.f32.vlgmr.msra.gmra.mxu0 %vm665_vm10, %v3200_v45  ;;  %v2684_v44 = vld [vmem:[%s3409_s2 + $0x8] sm:$0xf]  ;;  %v2670_v46 = vld [vmem:[%s3408_s1 + $0x1c] sm:$0xf] }
 0x211   :  { %v2842_v48 = vpop.f32.mrf.mxu1  ;;  %2867 = vmatprep.mubr.msk.f32.mxu0 %vm3059_vm0, %v3058_v1 }
 0x212   :  { %v3206_v49 = vadd.f32 %v643_v38, %v638_v47  ;;  %v2669_v48 = vld [vmem:[%s3408_s1 + $0x18] sm:$0xf] }
 0x214   :  { %2863 = vmatmul.mubr.msk.f32.vlgmr.msra.gmra.mxu1 %vm665_vm10, %v3206_v49 }
 0x215   :  { %2872 = vmatprep.mubr.msk.f32.mxu1 %vm3059_vm0, %v3058_v1 }
 0x2d0   :  { %v735_v50 = vpop.f32.mrf.mxu0 }
 0x2d1   :  { %1118 = vrot.lane.b32.xlu0 %v735_v50, %s3064_s25  ;;  %817 = vrot.lane.b32.xlu1 %v735_v50, %s3065_s26 }
 0x2d2   :  { %v2853_v51 = vpop.f32.mrf.mxu0 }
 0x2d4   :  { %v808_v53 = vpop.f32.mrf.mxu1 }
 0x2d5   :  { %1275 = vperm.xlu0 %3010, %v2654_v52   ;;  %895 = vrot.lane.b32.xlu1 %v808_v53, %s3065_s26  ;;  %v2679_v52 = vld [vmem:[%s3408_s1 + $0x20] sm:$0xf] }
 0x2d6   :  { %v2864_v54 = vpop.f32.mrf.mxu1 }
 0x2d7   :  { %v1941_v54 = vadd.s32 1, %v3171_v25  ;;  %v1938_v25 = vadd.s32 1, %v3091_v2 }
 0x2d9   :  { %1195 = vrot.lane.b32.xlu1 %v808_v53, %s3064_s25  ;;  %vm1945_vm15 = vcmp.eq.s32.totalorder %v3101_v5, %v1941_v54  ;;  %vm1942_vm3 = vcmp.eq.s32.totalorder %v3101_v5, %v1938_v25 }
 0x343   :  { %v818_v56 = vpop.permute.xlu1 %817  ;;  %v1119_v59 = vpop.permute.xlu0 %1118 }
 0x344   :  { %2866 = vmatpush3.msk.msra.mxu0 %vm189_vm4, %v818_v56  ;;  %v1939_v56 = vadd.s32 1, %v3098_v3 }
 0x345   :  { %2868 = vmatmul.mubr.msk.f32.vlgmr.msra.gmra.mxu0 %vm185_vm5, %v2640_v55  ;;  %2875 = vmatprep.subr.mxu0 %v3058_v1 }
 0x346   :  { %2876 = vmatpush3.msk.msra.mxu0 %vm189_vm4, %v735_v50  ;;  %2877 = vmatprep.mubr.msk.f32.mxu0 %vm3059_vm0, %v3058_v1  ;;  %vm1943_vm2 = vcmp.eq.s32.totalorder %v3101_v5, %v1939_v56 }
 0x347   :  { %v896_v58 = vpop.permute.xlu1 %895  ;;  %2885 = vmatprep.subr.mxu0 %v3058_v1 }
 0x348   :  { %2871 = vmatpush3.msk.msra.mxu1 %vm189_vm4, %v896_v58 }
 0x349   :  { %2873 = vmatmul.mubr.msk.f32.vlgmr.msra.gmra.mxu1 %vm185_vm5, %v2640_v55  ;;  %2878 = vmatmul.mubr.msk.f32.vlgmr.msra.gmra.mxu0 %vm185_vm5, %v2639_v57  ;;  %v1940_v55 = vadd.s32 1, %v3175_v27 }
 0x34a   :  { %2880 = vmatprep.subr.mxu1 %v3058_v1  ;;  %2886 = vmatpush3.msk.msra.mxu0 %vm189_vm4, %v1119_v59 }
 0x34b   :  { %2881 = vmatpush3.msk.msra.mxu1 %vm189_vm4, %v808_v53  ;;  %v1196_v61 = vpop.permute.xlu1 %1195  ;;  %2882 = vmatprep.mubr.msk.f32.mxu1 %vm3059_vm0, %v3058_v1  ;;  %vm1944_vm1 = vcmp.eq.s32.totalorder %v3101_v5, %v1940_v55 }
 0x34c   :  { %2887 = vmatprep.mubr.msk.f32.mxu0 %vm3059_vm0, %v3058_v1  ;;  %2890 = vmatprep.subr.mxu1 %v3058_v1 }
 0x34d   :  { %2883 = vmatmul.mubr.msk.f32.vlgmr.msra.gmra.mxu1 %vm185_vm5, %v2639_v57  ;;  %2888 = vmatmul.mubr.msk.f32.vlgmr.msra.gmra.mxu0 %vm185_vm5, %v2649_v60 }
 0x34e   :  { %2891 = vmatpush3.msk.msra.mxu1 %vm189_vm4, %v1196_v61  ;;  %2892 = vmatprep.mubr.msk.f32.mxu1 %vm3059_vm0, %v3058_v1 }
 0x34f   :  { %2895 = vmatprep.subr.mxu0 %v3058_v1  ;;  %2906 = vmatprep.subr.mxu1 %v3058_v1 }
 0x350   :  { %2903 = vmatprep.mubr.msk.f32.mxu0 %vm3059_vm0, %v3058_v1  ;;  %2896 = vmatpush3.msk.msra.mxu0 %vm1301_vm11, %v3060_v9  ;;  %v1276_v16 = vpop.permute.xlu0 %1275 }
 0x351   :  { %2893 = vmatmul.mubr.msk.f32.vlgmr.msra.gmra.mxu1 %vm185_vm5, %v2649_v60  ;;  %2897 = vmatprep.subr.mxu0 %v3058_v1 }
 0x352   :  { %2914 = vmatprep.mubr.msk.f32.mxu1 %vm3059_vm0, %v3058_v1  ;;  %2907 = vmatpush3.msk.msra.mxu1 %vm1301_vm11, %v3060_v9 }
 0x353   :  { %2908 = vmatprep.subr.mxu1 %v3058_v1  ;;  %2898 = vmatpush3.msk.msra.mxu0 %vm1300_vm12, %v3060_v9 }
 0x354   :  { %2909 = vmatpush3.msk.msra.mxu1 %vm1300_vm12, %v3060_v9  ;;  %2899 = vmatprep.subr.mxu0 %v3058_v1 }
 0x355   :  { %2910 = vmatprep.subr.mxu1 %v3058_v1  ;;  %2900 = vmatpush3.msk.msra.mxu0 %vm1299_vm13, %v3060_v9 }
 0x356   :  { %2911 = vmatpush3.msk.msra.mxu1 %vm1299_vm13, %v3060_v9  ;;  %2901 = vmatprep.subr.mxu0 %v3058_v1 }
 0x357   :  { %2912 = vmatprep.subr.mxu1 %v3058_v1  ;;  %2902 = vmatpush3.msk.msra.mxu0 %vm1298_vm14, %v3060_v9 }
 0x358   :  { %2913 = vmatpush3.msk.msra.mxu1 %vm1298_vm14, %v3060_v9  ;;  %2917 = vmatprep.subr.mxu0 %v3058_v1 }
 0x359   :  { %2922 = vmatprep.subr.mxu1 %v3058_v1 }
 0x405   :  { %v890_v6 = vpop.f32.mrf.mxu0 }
 0x407   :  { %v2869_v7 = vpop.f32.mrf.mxu0 }
 0x409   :  { %v965_v8 = vpop.f32.mrf.mxu1  ;;  %v1040_v10 = vpop.f32.mrf.mxu0 }
 0x40a   :  { %v1041_v13 = vadd.f32 %v1040_v10, %v890_v6 }
 0x40b   :  { %v2874_v11 = vpop.f32.mrf.mxu1  ;;  %v2879_v12 = vpop.f32.mrf.mxu0 }
 0x40d   :  { %v1112_v14 = vpop.f32.mrf.mxu1  ;;  %v1191_v15 = vpop.f32.mrf.mxu0 }
 0x40e   :  { %v1269_v17 = vadd.f32 %v1191_v15, %v1041_v13  ;;  %v1113_v20 = vadd.f32 %v1112_v14, %v965_v8 }
 0x40f   :  { %v2884_v18 = vpop.f32.mrf.mxu1  ;;  %v2889_v19 = vpop.f32.mrf.mxu0 }
 0x410   :  { %v1278_v21 = vadd.f32 %v1276_v16, %v1269_v17 }
 0x411   :  { %v1265_v22 = vpop.f32.mrf.mxu1 }
 0x412   :  { %v1280_v23 = vsub.f32 0.0, %v1278_v21  ;;  %v1270_v24 = vadd.f32 %v1265_v22, %v1113_v20 }
 0x413   :  { %v2894_v26 = vpop.f32.mrf.mxu1 }
 0x414   :  { %v1282_v28 = vmul.f32 1.442695, %v1280_v23  ;;  %v1279_v29 = vadd.f32 %v1276_v16, %v1270_v24 }
 0x416   :  { %3012 = vpow2.f32 %v1282_v28  ;;  %v1281_v30 = vsub.f32 0.0, %v1279_v29 }
 0x418   :  { %v1284_v31 = vmul.f32 1.442695, %v1281_v30  ;;  %v2714_v30 = vld [vmem:[%s3409_s2 + $0xc] sm:$0xf] }
 0x41a   :  { %3014 = vpow2.f32 %v1284_v31  ;;  %v2700_v31 = vld [vmem:[%s3408_s1 + $0x28] sm:$0xf] }
 0x423   :  { %v3013_v32 = vpop.eup %3012 }
 0x424   :  { %v1286_v33 = vadd.f32 1.0, %v3013_v32 }
 0x426   :  { %3016 = vrcp.f32 %v1286_v33  ;;  %v2699_v33 = vld [vmem:[%s3408_s1 + $0x24] sm:$0xf] }
 0x427   :  { %v3015_v34 = vpop.eup %3014 }
 0x428   :  { %v1287_v35 = vadd.f32 1.0, %v3015_v34 }
 0x42a   :  { %3018 = vrcp.f32 %v1287_v35 }
 0x433   :  { %v3017_v36 = vpop.eup %3016 }
 0x434   :  { %v1292_v37 = vmul.f32 %v3017_v36, %v1278_v21  ;;  %v2709_v36 = vld [vmem:[%s3408_s1 + $0x2c] sm:$0xf]  ;;  %s3066_s1 = smov [#allocation2]  }
 0x435   :  { %s2592_s22 = sshll.u32 %s3066_s1, 4  ;;  %s2593_s22 = int_to_ptr.vmem [resolvable:$true] %s2592_s22 }
 0x436   :  { %2904 = vmatmul.mubr.msk.f32.vlgmr.msra.gmra.mxu0 %vm665_vm10, %v1292_v37  ;;  %s3036_s23 = scalar_lea.vmem %s2593_s22, 128  ;;  %p3041_p1 = scmp.lt.s32.totalorder %s2593_s22, %s2593_s22 }
 0x437   :  { %v3019_v38 = vpop.eup %3018  ;;  %2919 = vmatprep.mubr.msk.f32.mxu0 %vm3059_vm0, %v3058_v1  ;;  %p3037_p0 = scmp.ne.s32.totalorder %s2593_s22, %s3036_s23  ;;  %p3042_p2 = scmp.lt.s32.totalorder %s3036_s23, %s3036_s23 }
 0x438   :  { %v1293_v39 = vmul.f32 %v3019_v38, %v1279_v29 }
 0x439   :  { %p3043_p3 = por %p3042_p2, %p3041_p1 }
 0x43a   :  { %2915 = vmatmul.mubr.msk.f32.vlgmr.msra.gmra.mxu1 %vm665_vm10, %v1293_v39 }
 0x43b   :  { %2924 = vmatprep.mubr.msk.f32.mxu1 %vm3059_vm0, %v3058_v1  ;;  %p3044_p4 = pnand %p3043_p3, %p3037_p0 }
 0x4f6   :  { %v1379_v40 = vpop.f32.mrf.mxu0 }
 0x4f7   :  { %1461 = vrot.lane.b32.xlu1 %v1379_v40, %s3061_s0 }
 0x4f8   :  { %v2905_v41 = vpop.f32.mrf.mxu0 }
 0x4fa   :  { %v1452_v42 = vpop.f32.mrf.mxu1 }
 0x4fb   :  { %1539 = vrot.lane.b32.xlu0 %v1452_v42, %s3061_s0  ;;  %1762 = vrot.lane.b32.xlu1 %v1379_v40, %s3065_s26 }
 0x4fc   :  { %v2916_v43 = vpop.f32.mrf.mxu1 }
 0x4ff   :  { %1839 = vrot.lane.b32.xlu0 %v1452_v42, %s3065_s26  ;;  %1919 = vperm.xlu1 %3011, %v2684_v44  }
 0x569   :  { %v1462_v47 = vpop.permute.xlu1 %1461 }
 0x56a   :  { %2918 = vmatpush3.msk.msra.mxu0 %vm189_vm4, %v1462_v47 }
 0x56b   :  { %2920 = vmatmul.mubr.msk.f32.vlgmr.msra.gmra.mxu0 %vm185_vm5, %v2670_v46  ;;  %2927 = vmatprep.subr.mxu0 %v3058_v1 }
 0x56c   :  { %2928 = vmatpush3.msk.msra.mxu0 %vm189_vm4, %v1379_v40  ;;  %2929 = vmatprep.mubr.msk.f32.mxu0 %vm3059_vm0, %v3058_v1 }
 0x56d   :  { %v1540_v50 = vpop.permute.xlu0 %1539  ;;  %v1763_v51 = vpop.permute.xlu1 %1762  ;;  %2937 = vmatprep.subr.mxu0 %v3058_v1 }
 0x56e   :  { %2923 = vmatpush3.msk.msra.mxu1 %vm189_vm4, %v1540_v50 }
 0x56f   :  { %2925 = vmatmul.mubr.msk.f32.vlgmr.msra.gmra.mxu1 %vm185_vm5, %v2670_v46  ;;  %2930 = vmatmul.mubr.msk.f32.vlgmr.msra.gmra.mxu0 %vm185_vm5, %v2669_v48 }
 0x570   :  { %2932 = vmatprep.subr.mxu1 %v3058_v1  ;;  %2938 = vmatpush3.msk.msra.mxu0 %vm189_vm4, %v1763_v51 }
 0x571   :  { %2933 = vmatpush3.msk.msra.mxu1 %vm189_vm4, %v1452_v42  ;;  %v1840_v53 = vpop.permute.xlu0 %1839  ;;  %2934 = vmatprep.mubr.msk.f32.mxu1 %vm3059_vm0, %v3058_v1 }
 0x572   :  { %2939 = vmatprep.mubr.msk.f32.mxu0 %vm3059_vm0, %v3058_v1  ;;  %2942 = vmatprep.subr.mxu1 %v3058_v1 }
 0x573   :  { %2935 = vmatmul.mubr.msk.f32.vlgmr.msra.gmra.mxu1 %vm185_vm5, %v2669_v48  ;;  %2940 = vmatmul.mubr.msk.f32.vlgmr.msra.gmra.mxu0 %vm185_vm5, %v2679_v52 }
 0x574   :  { %2943 = vmatpush3.msk.msra.mxu1 %vm189_vm4, %v1840_v53  ;;  %2944 = vmatprep.mubr.msk.f32.mxu1 %vm3059_vm0, %v3058_v1 }
 0x575   :  { %2947 = vmatprep.subr.mxu0 %v3058_v1  ;;  %2958 = vmatprep.subr.mxu1 %v3058_v1 }
 0x576   :  { %2955 = vmatprep.mubr.msk.f32.mxu0 %vm3059_vm0, %v3058_v1  ;;  %2948 = vmatpush3.msk.msra.mxu0 %vm1945_vm15, %v3060_v9 }
 0x577   :  { %2945 = vmatmul.mubr.msk.f32.vlgmr.msra.gmra.mxu1 %vm185_vm5, %v2679_v52  ;;  %2949 = vmatprep.subr.mxu0 %v3058_v1 }
 0x578   :  { %2966 = vmatprep.mubr.msk.f32.mxu1 %vm3059_vm0, %v3058_v1  ;;  %2959 = vmatpush3.msk.msra.mxu1 %vm1945_vm15, %v3060_v9 }
 0x579   :  { %2960 = vmatprep.subr.mxu1 %v3058_v1  ;;  %2950 = vmatpush3.msk.msra.mxu0 %vm1944_vm1, %v3060_v9 }
 0x57a   :  { %2961 = vmatpush3.msk.msra.mxu1 %vm1944_vm1, %v3060_v9  ;;  %2951 = vmatprep.subr.mxu0 %v3058_v1  ;;  %v1920_v61 = vpop.permute.xlu1 %1919 }
 0x57b   :  { %2962 = vmatprep.subr.mxu1 %v3058_v1  ;;  %2952 = vmatpush3.msk.msra.mxu0 %vm1943_vm2, %v3060_v9 }
 0x57c   :  { %2963 = vmatpush3.msk.msra.mxu1 %vm1943_vm2, %v3060_v9  ;;  %2953 = vmatprep.subr.mxu0 %v3058_v1 }
 0x57d   :  { %2964 = vmatprep.subr.mxu1 %v3058_v1  ;;  %2954 = vmatpush3.msk.msra.mxu0 %vm1942_vm3, %v3060_v9 }
 0x57e   :  { %2965 = vmatpush3.msk.msra.mxu1 %vm1942_vm3, %v3060_v9  ;;  %2969 = vmatprep.subr.mxu0 %v3058_v1 }
 0x57f   :  { %2974 = vmatprep.subr.mxu1 %v3058_v1 }
 0x62b   :  { %v1534_v2 = vpop.f32.mrf.mxu0 }
 0x62d   :  { %v2921_v3 = vpop.f32.mrf.mxu0 }
 0x62f   :  { %v1609_v27 = vpop.f32.mrf.mxu1  ;;  %v1684_v57 = vpop.f32.mrf.mxu0 }
 0x630   :  { %v1685_v60 = vadd.f32 %v1684_v57, %v1534_v2 }
 0x631   :  { %v2926_v58 = vpop.f32.mrf.mxu1  ;;  %v2931_v59 = vpop.f32.mrf.mxu0 }
 0x633   :  { %v1756_v62 = vpop.f32.mrf.mxu1  ;;  %v1835_v5 = vpop.f32.mrf.mxu0 }
 0x634   :  { %v1913_v63 = vadd.f32 %v1835_v5, %v1685_v60  ;;  %v1757_v6 = vadd.f32 %v1756_v62, %v1609_v27 }
 0x635   :  { %v2936_v0 = vpop.f32.mrf.mxu1  ;;  %v2941_v4 = vpop.f32.mrf.mxu0 }
 0x636   :  { %v1922_v7 = vadd.f32 %v1920_v61, %v1913_v63 }
 0x637   :  { %v1909_v9 = vpop.f32.mrf.mxu1 }
 0x638   :  { %v1924_v8 = vsub.f32 0.0, %v1922_v7  ;;  %v1914_v10 = vadd.f32 %v1909_v9, %v1757_v6 }
 0x639   :  { %v2946_v11 = vpop.f32.mrf.mxu1 }
 0x63a   :  { %v1926_v12 = vmul.f32 1.442695, %v1924_v8  ;;  %v1923_v13 = vadd.f32 %v1920_v61, %v1914_v10 }
 0x63c   :  { %3020 = vpow2.f32 %v1926_v12  ;;  %v1925_v14 = vsub.f32 0.0, %v1923_v13 }
 0x63e   :  { %v1928_v15 = vmul.f32 1.442695, %v1925_v14 }
 0x640   :  { %3022 = vpow2.f32 %v1928_v15 }
 0x649   :  { %v3021_v16 = vpop.eup %3020 }
 0x64a   :  { %v1930_v17 = vadd.f32 1.0, %v3021_v16 }
 0x64c   :  { %3024 = vrcp.f32 %v1930_v17 }
 0x64d   :  { %v3023_v18 = vpop.eup %3022 }
 0x64e   :  { %v1931_v19 = vadd.f32 1.0, %v3023_v18 }
 0x650   :  { %3026 = vrcp.f32 %v1931_v19 }
 0x659   :  { %v3025_v20 = vpop.eup %3024 }
 0x65a   :  { %v1936_v21 = vmul.f32 %v3025_v20, %v1922_v7 }
 0x65c   :  { %2956 = vmatmul.mubr.msk.f32.vlgmr.msra.gmra.mxu0 %vm665_vm10, %v1936_v21 }
 0x65d   :  { %v3027_v22 = vpop.eup %3026  ;;  %2971 = vmatprep.mubr.msk.f32.mxu0 %vm3059_vm0, %v3058_v1 }
 0x65e   :  { %v1937_v23 = vmul.f32 %v3027_v22, %v1923_v13 }
 0x660   :  { %2967 = vmatmul.mubr.msk.f32.vlgmr.msra.gmra.mxu1 %vm665_vm10, %v1937_v23 }
 0x661   :  { %2976 = vmatprep.mubr.msk.f32.mxu1 %vm3059_vm0, %v3058_v1 }
 0x71c   :  { %v2023_v24 = vpop.f32.mrf.mxu0 }
 0x71d   :  { %2105 = vrot.lane.b32.xlu0 %v2023_v24, %s3062_s16 }
 0x71e   :  { %v2957_v26 = vpop.f32.mrf.mxu0 }
 0x720   :  { %v2096_v28 = vpop.f32.mrf.mxu1 }
 0x721   :  { %2183 = vrot.lane.b32.xlu1 %v2096_v28, %s3062_s16  ;;  %2406 = vrot.lane.b32.xlu0 %v2023_v24, %s3061_s0 }
 0x722   :  { %v2968_v29 = vpop.f32.mrf.mxu1 }
 0x725   :  { %2483 = vrot.lane.b32.xlu1 %v2096_v28, %s3061_s0  ;;  %2563 = vperm.xlu0 %3010, %v2714_v30  }
 0x78f   :  { %v2106_v32 = vpop.permute.xlu0 %2105 }
 0x790   :  { %2970 = vmatpush3.msk.msra.mxu0 %vm189_vm4, %v2106_v32 }
 0x791   :  { %2972 = vmatmul.mubr.msk.f32.vlgmr.msra.gmra.mxu0 %vm185_vm5, %v2700_v31  ;;  %2979 = vmatprep.subr.mxu0 %v3058_v1 }
 0x792   :  { %2980 = vmatpush3.msk.msra.mxu0 %vm189_vm4, %v2023_v24  ;;  %2981 = vmatprep.mubr.msk.f32.mxu0 %vm3059_vm0, %v3058_v1 }
 0x793   :  { %v2184_v34 = vpop.permute.xlu1 %2183  ;;  %v2407_v35 = vpop.permute.xlu0 %2406  ;;  %2989 = vmatprep.subr.mxu0 %v3058_v1 }
 0x794   :  { %2975 = vmatpush3.msk.msra.mxu1 %vm189_vm4, %v2184_v34 }
 0x795   :  { %2977 = vmatmul.mubr.msk.f32.vlgmr.msra.gmra.mxu1 %vm185_vm5, %v2700_v31  ;;  %2982 = vmatmul.mubr.msk.f32.vlgmr.msra.gmra.mxu0 %vm185_vm5, %v2699_v33 }
 0x796   :  { %2984 = vmatprep.subr.mxu1 %v3058_v1  ;;  %2990 = vmatpush3.msk.msra.mxu0 %vm189_vm4, %v2407_v35 }
 0x797   :  { %2985 = vmatpush3.msk.msra.mxu1 %vm189_vm4, %v2096_v28  ;;  %v2484_v37 = vpop.permute.xlu1 %2483  ;;  %2986 = vmatprep.mubr.msk.f32.mxu1 %vm3059_vm0, %v3058_v1 }
 0x798   :  { %2991 = vmatprep.mubr.msk.f32.mxu0 %vm3059_vm0, %v3058_v1  ;;  %2994 = vmatprep.subr.mxu1 %v3058_v1 }
 0x799   :  { %2987 = vmatmul.mubr.msk.f32.vlgmr.msra.gmra.mxu1 %vm185_vm5, %v2699_v33  ;;  %2992 = vmatmul.mubr.msk.f32.vlgmr.msra.gmra.mxu0 %vm185_vm5, %v2709_v36 }
 0x79a   :  { %2995 = vmatpush3.msk.msra.mxu1 %vm189_vm4, %v2484_v37  ;;  %2996 = vmatprep.mubr.msk.f32.mxu1 %vm3059_vm0, %v3058_v1  ;;  %vm2584_vm0 = vcmask 257024  }
 0x79d   :  { %2997 = vmatmul.mubr.msk.f32.vlgmr.msra.gmra.mxu1 %vm185_vm5, %v2709_v36 }
 0x7a0   :  { %v2564_v48 = vpop.permute.xlu0 %2563 }
 0x851   :  { %v2178_v38 = vpop.f32.mrf.mxu0 }
 0x853   :  { %v2973_v39 = vpop.f32.mrf.mxu0 }
 0x855   :  { %v2253_v40 = vpop.f32.mrf.mxu1  ;;  %v2328_v41 = vpop.f32.mrf.mxu0 }
 0x856   :  { %v2329_v44 = vadd.f32 %v2328_v41, %v2178_v38 }
 0x857   :  { %v2978_v42 = vpop.f32.mrf.mxu1  ;;  %v2983_v43 = vpop.f32.mrf.mxu0 }
 0x859   :  { %v2400_v46 = vpop.f32.mrf.mxu1  ;;  %v2479_v47 = vpop.f32.mrf.mxu0 }
 0x85a   :  { %v2557_v50 = vadd.f32 %v2479_v47, %v2329_v44  ;;  %v2401_v53 = vadd.f32 %v2400_v46, %v2253_v40 }
 0x85b   :  { %v2988_v51 = vpop.f32.mrf.mxu1  ;;  %v2993_v52 = vpop.f32.mrf.mxu0 }
 0x85c   :  { %v2566_v54 = vadd.f32 %v2564_v48, %v2557_v50 }
 0x85d   :  { %v2553_v55 = vpop.f32.mrf.mxu1 }
 0x85e   :  { %v2568_v56 = vsub.f32 0.0, %v2566_v54  ;;  %v2558_v1 = vadd.f32 %v2553_v55, %v2401_v53 }
 0x85f   :  { %v2998_v25 = vpop.f32.mrf.mxu1 }
 0x860   :  { %v2570_v2 = vmul.f32 1.442695, %v2568_v56  ;;  %v2567_v3 = vadd.f32 %v2564_v48, %v2558_v1 }
 0x862   :  { %3028 = vpow2.f32 %v2570_v2  ;;  %v2569_v27 = vsub.f32 0.0, %v2567_v3 }
 0x864   :  { %v2572_v57 = vmul.f32 1.442695, %v2569_v27 }
 0x866   :  { %3030 = vpow2.f32 %v2572_v57 }
 0x86f   :  { %v3029_v58 = vpop.eup %3028 }
 0x870   :  { %v2574_v59 = vadd.f32 1.0, %v3029_v58 }
 0x872   :  { %3032 = vrcp.f32 %v2574_v59 }
 0x873   :  { %v3031_v60 = vpop.eup %3030 }
 0x874   :  { %v2575_v61 = vadd.f32 1.0, %v3031_v60 }
 0x876   :  { %3034 = vrcp.f32 %v2575_v61 }
 0x87f   :  { %v3033_v62 = vpop.eup %3032 }
 0x880   :  { %v2580_v5 = vmul.f32 %v3033_v62, %v2566_v54 }
 0x882   :  { %v2582_v63 = vadd.f32 %v2580_v5, %v3200_v45 }
 0x883   :  { %v3035_v0 = vpop.eup %3034 }
 0x884   :  { %v2581_v4 = vmul.f32 %v3035_v0, %v2567_v3  ;;  %2585 = vst.msk [vmem:[#allocation2] sm:$0xf] %vm2584_vm0, %v2582_v63 }
 0x886   :  { %v2583_v6 = vadd.f32 %v2581_v4, %v3206_v49 }
 0x888   :  { %2586 = vst.msk [vmem:[#allocation2 + $0x4] sm:$0xf] %vm2584_vm0, %v2583_v6 }
 0x889   :  { %3047 = shalt.err (!%p3044_p4)
}
 0x88a   :  { %s3067_s24 = smov 64   ;;  %s3068_s25 = smov 4  }
 0x88b   :  { %2598 = dma.vmem_to_hbm [thread:$0]  %s2593_s22, 128, %s3410_s3, [#allocation3], %s3067_s24, %s3067_s24, %s3068_s25  }
 0x88c   :  { %3056 = dma.done.wait [#allocation3], 128  }
 0x88d   :  { %3057 = vsyncadd [#allocation3], 4294967168 }
 0x88e   :  { %2602 = vsyncpa [#allocation3], 1 }

</bundles_post_ra>
